<compile_context>
chip_gen: v5e
topology: v5e:2x2
jax: 0.10.0
libtpu: 0.0.40
codegen_flags: <defaults>
</compile_context>

<pallas_src>
import numpy as np
import jax
import jax.numpy as jnp
from jax.experimental import pallas as pl
from jax.experimental.pallas import tpu as pltpu


def _bilinear_matrix_align_corners(out_size: int, in_size: int) -> np.ndarray:
    """(out_size, in_size) interpolation matrix, PyTorch bilinear align_corners=True."""
    if out_size == 1:
        src = np.zeros((1,), dtype=np.float64)
    else:
        src = np.arange(out_size, dtype=np.float64) * (in_size - 1) / (out_size - 1)
    i0 = np.clip(np.floor(src).astype(np.int64), 0, in_size - 1)
    i1 = np.minimum(i0 + 1, in_size - 1)
    w1 = (src - i0).astype(np.float32)
    w0 = (1.0 - w1).astype(np.float32)
    mat = np.zeros((out_size, in_size), dtype=np.float32)
    rows = np.arange(out_size)
    np.add.at(mat, (rows, i0), w0)
    np.add.at(mat, (rows, i1), w1)
    return mat


def _pick_tile_ho(ho_pad: int, max_tile: int = 512) -> int:
    """Largest divisor of ho_pad that is a multiple of 32 and <= max_tile."""
    if ho_pad <= max_tile:
        return ho_pad
    best = 32
    for t in range(32, max_tile + 1, 32):
        if ho_pad % t == 0:
            best = t
    return best


def _make_kernel(C, Ho, Wo, tile_ho, wo_pad, rows_first, matmul_dtype):
    def kernel(img_ref, pert_ref, wh_ref, wwT_ref, mean_ref, istd_ref, out_ref):
        t = pl.program_id(1)
        row0 = t * tile_ho
        rows = jax.lax.broadcasted_iota(jnp.int32, (tile_ho, wo_pad), 0) + row0
        cols = jax.lax.broadcasted_iota(jnp.int32, (tile_ho, wo_pad), 1)
        # valid == 1 inside the (Ho, Wo) image, 0 in the fused F.pad region.
        valid = ((rows < Ho) & (cols < Wo)).astype(jnp.float32)

        wh = wh_ref[...].astype(matmul_dtype)    # (tile_ho, H); rows >= Ho are zero
        wwT = wwT_ref[...].astype(matmul_dtype)  # (W, wo_pad); cols >= Wo are zero

        for c in range(C):  # C is small and static -> unrolled
            istd_c = istd_ref[c]
            # (img + pert).clamp(0, 255), pre-scaled by 1/std (normalize is linear)
            x = (jnp.clip(img_ref[0, c] + pert_ref[0, c], 0.0, 255.0) * istd_c
                 ).astype(matmul_dtype)
            # separable bilinear resize (align_corners=True) on the MXU;
            # zero-padded weights make the pad region of y exactly 0.
            if rows_first:
                tmp = jnp.dot(wh, x, preferred_element_type=jnp.float32
                              ).astype(matmul_dtype)            # (tile_ho, W)
                y = jnp.dot(tmp, wwT, preferred_element_type=jnp.float32)
            else:
                tmp = jnp.dot(x, wwT, preferred_element_type=jnp.float32
                              ).astype(matmul_dtype)            # (H, wo_pad)
                y = jnp.dot(wh, tmp, preferred_element_type=jnp.float32)
            # subtract the normalization bias only inside the valid region so the
            # fused pad stays zero (matches F.pad(..., 'constant', 0)).
            out_ref[0, c] = y - (mean_ref[c] * istd_c) * valid

    return kernel


def preprocess_pallas(img, pert, out_hw, mean, std, matmul_dtype=jnp.float32):
    """img: (N, C, H, W) float32 in [0,255]; pert: (1 or N, C, H, W).
    Returns (N, C, Ho_pad, Wo_pad) float32: clamp+bilinear(align_corners)+normalize,
    zero-padded up to multiples of 32 (the F.pad is fused into the kernel)."""
    N, C, H, W = img.shape
    Ho, Wo = int(out_hw[0]), int(out_hw[1])
    ho_pad = -(-Ho // 32) * 32
    wo_pad = -(-Wo // 32) * 32
    tile_ho = _pick_tile_ho(ho_pad)
    n_t = ho_pad // tile_ho

    # zero-padded interpolation matrices -> matmuls emit the padded output block
    wh_np = np.zeros((ho_pad, H), np.float32)
    wh_np[:Ho] = _bilinear_matrix_align_corners(Ho, H)
    wwT_np = np.zeros((W, wo_pad), np.float32)
    wwT_np[:, :Wo] = _bilinear_matrix_align_corners(Wo, W).T
    wh = jnp.asarray(wh_np)
    wwT = jnp.asarray(wwT_np)
    mean = jnp.asarray(mean, jnp.float32).reshape(C)
    istd = 1.0 / jnp.asarray(std, jnp.float32).reshape(C)

    # pert broadcasts over batch (module uses pert of shape (1, C, H, W))
    if pert.shape[0] == 1:
        pert_map = lambda n, t: (0, 0, 0, 0)
    else:
        pert_map = lambda n, t: (n, 0, 0, 0)

    # pick the cheaper contraction order for this image size
    cost_rows_first = ho_pad * H * W + ho_pad * W * wo_pad
    cost_cols_first = n_t * H * W * wo_pad + ho_pad * H * wo_pad
    rows_first = cost_rows_first <= cost_cols_first

    kernel = _make_kernel(C, Ho, Wo, tile_ho, wo_pad, rows_first, matmul_dtype)

    # VMEM budget (each pipelined block is double-buffered); clamp to safe range
    block_bytes = 4 * (2 * 2 * C * H * W            # img + pert blocks
                       + 2 * tile_ho * H            # wh tile
                       + 2 * W * wo_pad             # wwT
                       + 2 * C * tile_ho * wo_pad)  # output tile
    vmem_limit = int(min(max(2 * block_bytes + (2 << 20), 16 << 20), 64 << 20))

    grid_spec = pltpu.PrefetchScalarGridSpec(
        num_scalar_prefetch=0,
        grid=(N, n_t),
        in_specs=[
            pl.BlockSpec((1, C, H, W), lambda n, t: (n, 0, 0, 0)),   # full source plane resident
            pl.BlockSpec((1, C, H, W), pert_map),
            pl.BlockSpec((tile_ho, H), lambda n, t: (t, 0)),
            pl.BlockSpec((W, wo_pad), lambda n, t: (0, 0)),
            pl.BlockSpec(memory_space=pltpu.MemorySpace.SMEM),
            pl.BlockSpec(memory_space=pltpu.MemorySpace.SMEM),
        ],
        out_specs=pl.BlockSpec((1, C, tile_ho, wo_pad), lambda n, t: (n, 0, t, 0)),
    )
    return pl.pallas_call(
        kernel,
        out_shape=jax.ShapeDtypeStruct((N, C, ho_pad, wo_pad), jnp.float32),
        grid_spec=grid_spec,
        compiler_params=pltpu.CompilerParams(
            dimension_semantics=("parallel", "parallel"),
            vmem_limit_bytes=vmem_limit),
    )(img, pert, wh, wwT, mean, istd)


def model_train_loss_preprocess(x_hwc, pert, image_sizes, mean, std):
    """Mirrors the image path of get_train_data() used by model_train.loss().
    x_hwc: (H, W, 3) image in [0, 255]; pert: (1, 3, H, W).
    The final F.pad-to-/32 is fused into the Pallas kernel."""
    img = jnp.transpose(x_hwc, (2, 0, 1))[None].astype(jnp.float32)    # NCHW
    return preprocess_pallas(img, pert, image_sizes, mean, std)


def _reference_numpy(img_nchw, pert, image_sizes, mean, std):
    x = np.clip(np.asarray(img_nchw, np.float64) + np.asarray(pert, np.float64), 0.0, 255.0)
    N, C, H, W = x.shape
    Ho, Wo = image_sizes
    sh = np.arange(Ho) * (H - 1) / (Ho - 1) if Ho > 1 else np.zeros(1)
    sw = np.arange(Wo) * (W - 1) / (Wo - 1) if Wo > 1 else np.zeros(1)
    h0 = np.floor(sh).astype(int); h1 = np.minimum(h0 + 1, H - 1)
    w0 = np.floor(sw).astype(int); w1 = np.minimum(w0 + 1, W - 1)
    ah = sh - h0; aw = sw - w0
    out = np.zeros((N, C, Ho, Wo))
    for n in range(N):
        for c in range(C):
            p = x[n, c]
            out[n, c] = (p[h0][:, w0] * np.outer(1 - ah, 1 - aw)
                         + p[h0][:, w1] * np.outer(1 - ah, aw)
                         + p[h1][:, w0] * np.outer(ah, 1 - aw)
                         + p[h1][:, w1] * np.outer(ah, aw))
            out[n, c] = (out[n, c] - mean[c]) / std[c]
    pad_h = -(-Ho // 32) * 32
    pad_w = -(-Wo // 32) * 32
    return np.pad(out, ((0, 0), (0, 0), (0, pad_h - Ho), (0, pad_w - Wo)))


# TODO(synk): model_train.forward()/loss() invoke a full mmdet detector
# (backbone + heads + loss, loaded from a checkpoint) and output2det() does
# data-dependent NMS-style filtering — no clean Pallas equivalent; not implemented.

if __name__ == "__main__":
    key = jax.random.PRNGKey(0)
    k1, k2, k3, k4 = jax.random.split(key, 4)

    H, W = 16, 16                           # small synthetic BGR image
    image_sizes = (24, 20)                  # target (H, W) after resize
    mean = np.array([123.675, 116.28, 103.53], np.float32)   # standard mmdet values
    std = np.array([58.395, 57.12, 57.375], np.float32)

    # Path 1: mirrors model_train.loss()/get_train_data() (single image, pert (1,3,H,W))
    x_hwc = jax.random.uniform(k1, (H, W, 3), jnp.float32, 0.0, 255.0)
    pert = jax.random.uniform(k2, (1, 3, H, W), jnp.float32, -8.0, 8.0)
    out = jax.block_until_ready(model_train_loss_preprocess(x_hwc, pert, image_sizes, mean, std))
    img_nchw = np.transpose(np.asarray(x_hwc), (2, 0, 1))[None]
    ref = _reference_numpy(img_nchw, np.asarray(pert), image_sizes, mean, std)
    np.testing.assert_allclose(np.asarray(out), ref, rtol=1e-4, atol=1e-4)

    # Path 2: batched call (N=2) exercising the broadcast of the (1,C,H,W) perturbation
    imgs = jax.random.uniform(k3, (2, 3, H, W), jnp.float32, 0.0, 255.0)
    pert2 = jax.random.uniform(k4, (1, 3, H, W), jnp.float32, -8.0, 8.0)
    out2 = jax.block_until_ready(preprocess_pallas(imgs, pert2, image_sizes, mean, std))
    ref2 = _reference_numpy(np.asarray(imgs), np.asarray(pert2), image_sizes, mean, std)
    np.testing.assert_allclose(np.asarray(out2), ref2, rtol=1e-4, atol=1e-4)

    print("KERNEL_OK")
</pallas_src>

<mosaic_0001>
module attributes {stable_mosaic.version = 11 : i64} {
  func.func @kernel(%arg0: i32, %arg1: i32, %arg2: memref<1x3x16x16xf32, #tpu.memory_space<vmem>>, %arg3: memref<1x3x16x16xf32, #tpu.memory_space<vmem>>, %arg4: memref<32x16xf32, #tpu.memory_space<vmem>>, %arg5: memref<16x32xf32, #tpu.memory_space<vmem>>, %arg6: memref<3xf32, #tpu.memory_space<smem>>, %arg7: memref<3xf32, #tpu.memory_space<smem>>, %arg8: memref<1x3x32x32xf32, #tpu.memory_space<vmem>>) attributes {dimension_semantics = [#tpu.dimension_semantics<parallel>, #tpu.dimension_semantics<parallel>], iteration_bounds = array<i64: 1, 1>, scalar_prefetch = 0 : i64, scratch_operands = 0 : i64, tpu.core_type = #tpu.core_type<tc>, window_params = [{transform_indices = @transform_0, window_bounds = array<i64: 1, 3, 16, 16>}, {pipeline_mode = #tpu.pipeline_mode<synchronous>, transform_indices = @transform_1, window_bounds = array<i64: 1, 3, 16, 16>}, {transform_indices = @transform_2, window_bounds = array<i64: 32, 16>}, {pipeline_mode = #tpu.pipeline_mode<synchronous>, transform_indices = @transform_3, window_bounds = array<i64: 16, 32>}, {transform_indices = @transform_4, window_bounds = array<i64: 3>}, {transform_indices = @transform_5, window_bounds = array<i64: 3>}, {transform_indices = @transform_6, window_bounds = array<i64: 1, 3, 32, 32>}]} {
    %c32_i32 = arith.constant 32 : i32
    %0 = arith.muli %arg1, %c32_i32 : i32
    %1 = tpu.iota {dimensions = array<i32: 0>} : vector<32x32xi32>
    %2 = vector.broadcast %0 : i32 to vector<32x32xi32>
    %3 = arith.addi %1, %2 : vector<32x32xi32>
    %4 = tpu.iota {dimensions = array<i32: 1>} : vector<32x32xi32>
    %c24_i32 = arith.constant 24 : i32
    %5 = vector.broadcast %c24_i32 : i32 to vector<32x32xi32>
    %6 = arith.cmpi slt, %3, %5 : vector<32x32xi32>
    %c20_i32 = arith.constant 20 : i32
    %7 = vector.broadcast %c20_i32 : i32 to vector<32x32xi32>
    %8 = arith.cmpi slt, %4, %7 : vector<32x32xi32>
    %9 = arith.andi %6, %8 : vector<32x32xi1>
    %10 = arith.extui %9 : vector<32x32xi1> to vector<32x32xi32>
    %11 = arith.sitofp %10 : vector<32x32xi32> to vector<32x32xf32>
    %c0 = arith.constant 0 : index
    %c0_0 = arith.constant 0 : index
    %12 = vector.load %arg4[%c0, %c0_0] : memref<32x16xf32, #tpu.memory_space<vmem>>, vector<32x16xf32>
    %c0_1 = arith.constant 0 : index
    %c0_2 = arith.constant 0 : index
    %13 = vector.load %arg5[%c0_1, %c0_2] : memref<16x32xf32, #tpu.memory_space<vmem>>, vector<16x32xf32>
    %c0_3 = arith.constant 0 : index
    %14 = memref.load %arg7[%c0_3] : memref<3xf32, #tpu.memory_space<smem>>
    %c0_4 = arith.constant 0 : index
    %c0_5 = arith.constant 0 : index
    %c0_6 = arith.constant 0 : index
    %c0_7 = arith.constant 0 : index
    %15 = vector.load %arg2[%c0_4, %c0_5, %c0_6, %c0_7] : memref<1x3x16x16xf32, #tpu.memory_space<vmem>>, vector<1x1x16x16xf32>
    %16 = vector.shape_cast %15 : vector<1x1x16x16xf32> to vector<16x16xf32>
    %c0_8 = arith.constant 0 : index
    %c0_9 = arith.constant 0 : index
    %c0_10 = arith.constant 0 : index
    %c0_11 = arith.constant 0 : index
    %17 = vector.load %arg3[%c0_8, %c0_9, %c0_10, %c0_11] : memref<1x3x16x16xf32, #tpu.memory_space<vmem>>, vector<1x1x16x16xf32>
    %18 = vector.shape_cast %17 : vector<1x1x16x16xf32> to vector<16x16xf32>
    %19 = arith.addf %16, %18 : vector<16x16xf32>
    %cst = arith.constant 0.000000e+00 : f32
    %cst_12 = arith.constant 2.550000e+02 : f32
    %20 = vector.broadcast %cst : f32 to vector<16x16xf32>
    %21 = arith.maximumf %20, %19 : vector<16x16xf32>
    %22 = vector.broadcast %cst_12 : f32 to vector<16x16xf32>
    %23 = arith.minimumf %22, %21 : vector<16x16xf32>
    %24 = vector.broadcast %14 : f32 to vector<16x16xf32>
    %25 = arith.mulf %23, %24 : vector<16x16xf32>
    %cst_13 = arith.constant dense<0.000000e+00> : vector<32x16xf32>
    %26 = tpu.matmul %12, %25, %cst_13 {dimension_numbers = #tpu.dot_dimension_numbers<[1], [0], [0], [1], [0, 0, 1, 1], [], []>} : vector<32x16xf32>, vector<16x16xf32>, vector<32x16xf32> -> vector<32x16xf32>
    %cst_14 = arith.constant dense<0.000000e+00> : vector<32x32xf32>
    %27 = tpu.matmul %26, %13, %cst_14 {dimension_numbers = #tpu.dot_dimension_numbers<[1], [0], [0], [1], [0, 0, 1, 1], [], []>} : vector<32x16xf32>, vector<16x32xf32>, vector<32x32xf32> -> vector<32x32xf32>
    %c0_15 = arith.constant 0 : index
    %28 = memref.load %arg6[%c0_15] : memref<3xf32, #tpu.memory_space<smem>>
    %29 = arith.mulf %28, %14 : f32
    %30 = vector.broadcast %29 : f32 to vector<32x32xf32>
    %31 = arith.mulf %30, %11 : vector<32x32xf32>
    %32 = arith.subf %27, %31 : vector<32x32xf32>
    %c0_16 = arith.constant 0 : index
    %c0_17 = arith.constant 0 : index
    %c0_18 = arith.constant 0 : index
    %c0_19 = arith.constant 0 : index
    %33 = vector.load %arg8[%c0_16, %c0_17, %c0_18, %c0_19] : memref<1x3x32x32xf32, #tpu.memory_space<vmem>>, vector<1x1x32x32xf32>
    %34 = vector.shape_cast %33 : vector<1x1x32x32xf32> to vector<32x32xf32>
    %35 = vector.shape_cast %32 : vector<32x32xf32> to vector<1x1x32x32xf32>
    tpu.vector_store %arg8[%c0_16, %c0_17, %c0_18, %c0_19], %35 {strides = array<i32>} : memref<1x3x32x32xf32, #tpu.memory_space<vmem>>, vector<1x1x32x32xf32>,
    %c1 = arith.constant 1 : index
    %36 = memref.load %arg7[%c1] : memref<3xf32, #tpu.memory_space<smem>>
    %c0_20 = arith.constant 0 : index
    %c1_21 = arith.constant 1 : index
    %c0_22 = arith.constant 0 : index
    %c0_23 = arith.constant 0 : index
    %37 = vector.load %arg2[%c0_20, %c1_21, %c0_22, %c0_23] : memref<1x3x16x16xf32, #tpu.memory_space<vmem>>, vector<1x1x16x16xf32>
    %38 = vector.shape_cast %37 : vector<1x1x16x16xf32> to vector<16x16xf32>
    %c0_24 = arith.constant 0 : index
    %c1_25 = arith.constant 1 : index
    %c0_26 = arith.constant 0 : index
    %c0_27 = arith.constant 0 : index
    %39 = vector.load %arg3[%c0_24, %c1_25, %c0_26, %c0_27] : memref<1x3x16x16xf32, #tpu.memory_space<vmem>>, vector<1x1x16x16xf32>
    %40 = vector.shape_cast %39 : vector<1x1x16x16xf32> to vector<16x16xf32>
    %41 = arith.addf %38, %40 : vector<16x16xf32>
    %cst_28 = arith.constant 0.000000e+00 : f32
    %cst_29 = arith.constant 2.550000e+02 : f32
    %42 = vector.broadcast %cst_28 : f32 to vector<16x16xf32>
    %43 = arith.maximumf %42, %41 : vector<16x16xf32>
    %44 = vector.broadcast %cst_29 : f32 to vector<16x16xf32>
    %45 = arith.minimumf %44, %43 : vector<16x16xf32>
    %46 = vector.broadcast %36 : f32 to vector<16x16xf32>
    %47 = arith.mulf %45, %46 : vector<16x16xf32>
    %cst_30 = arith.constant dense<0.000000e+00> : vector<32x16xf32>
    %48 = tpu.matmul %12, %47, %cst_30 {dimension_numbers = #tpu.dot_dimension_numbers<[1], [0], [0], [1], [0, 0, 1, 1], [], []>} : vector<32x16xf32>, vector<16x16xf32>, vector<32x16xf32> -> vector<32x16xf32>
    %cst_31 = arith.constant dense<0.000000e+00> : vector<32x32xf32>
    %49 = tpu.matmul %48, %13, %cst_31 {dimension_numbers = #tpu.dot_dimension_numbers<[1], [0], [0], [1], [0, 0, 1, 1], [], []>} : vector<32x16xf32>, vector<16x32xf32>, vector<32x32xf32> -> vector<32x32xf32>
    %c1_32 = arith.constant 1 : index
    %50 = memref.load %arg6[%c1_32] : memref<3xf32, #tpu.memory_space<smem>>
    %51 = arith.mulf %50, %36 : f32
    %52 = vector.broadcast %51 : f32 to vector<32x32xf32>
    %53 = arith.mulf %52, %11 : vector<32x32xf32>
    %54 = arith.subf %49, %53 : vector<32x32xf32>
    %c0_33 = arith.constant 0 : index
    %c1_34 = arith.constant 1 : index
    %c0_35 = arith.constant 0 : index
    %c0_36 = arith.constant 0 : index
    %55 = vector.load %arg8[%c0_33, %c1_34, %c0_35, %c0_36] : memref<1x3x32x32xf32, #tpu.memory_space<vmem>>, vector<1x1x32x32xf32>
    %56 = vector.shape_cast %55 : vector<1x1x32x32xf32> to vector<32x32xf32>
    %57 = vector.shape_cast %54 : vector<32x32xf32> to vector<1x1x32x32xf32>
    tpu.vector_store %arg8[%c0_33, %c1_34, %c0_35, %c0_36], %57 {strides = array<i32>} : memref<1x3x32x32xf32, #tpu.memory_space<vmem>>, vector<1x1x32x32xf32>,
    %c2 = arith.constant 2 : index
    %58 = memref.load %arg7[%c2] : memref<3xf32, #tpu.memory_space<smem>>
    %c0_37 = arith.constant 0 : index
    %c2_38 = arith.constant 2 : index
    %c0_39 = arith.constant 0 : index
    %c0_40 = arith.constant 0 : index
    %59 = vector.load %arg2[%c0_37, %c2_38, %c0_39, %c0_40] : memref<1x3x16x16xf32, #tpu.memory_space<vmem>>, vector<1x1x16x16xf32>
    %60 = vector.shape_cast %59 : vector<1x1x16x16xf32> to vector<16x16xf32>
    %c0_41 = arith.constant 0 : index
    %c2_42 = arith.constant 2 : index
    %c0_43 = arith.constant 0 : index
    %c0_44 = arith.constant 0 : index
    %61 = vector.load %arg3[%c0_41, %c2_42, %c0_43, %c0_44] : memref<1x3x16x16xf32, #tpu.memory_space<vmem>>, vector<1x1x16x16xf32>
    %62 = vector.shape_cast %61 : vector<1x1x16x16xf32> to vector<16x16xf32>
    %63 = arith.addf %60, %62 : vector<16x16xf32>
    %cst_45 = arith.constant 0.000000e+00 : f32
    %cst_46 = arith.constant 2.550000e+02 : f32
    %64 = vector.broadcast %cst_45 : f32 to vector<16x16xf32>
    %65 = arith.maximumf %64, %63 : vector<16x16xf32>
    %66 = vector.broadcast %cst_46 : f32 to vector<16x16xf32>
    %67 = arith.minimumf %66, %65 : vector<16x16xf32>
    %68 = vector.broadcast %58 : f32 to vector<16x16xf32>
    %69 = arith.mulf %67, %68 : vector<16x16xf32>
    %cst_47 = arith.constant dense<0.000000e+00> : vector<32x16xf32>
    %70 = tpu.matmul %12, %69, %cst_47 {dimension_numbers = #tpu.dot_dimension_numbers<[1], [0], [0], [1], [0, 0, 1, 1], [], []>} : vector<32x16xf32>, vector<16x16xf32>, vector<32x16xf32> -> vector<32x16xf32>
    %cst_48 = arith.constant dense<0.000000e+00> : vector<32x32xf32>
    %71 = tpu.matmul %70, %13, %cst_48 {dimension_numbers = #tpu.dot_dimension_numbers<[1], [0], [0], [1], [0, 0, 1, 1], [], []>} : vector<32x16xf32>, vector<16x32xf32>, vector<32x32xf32> -> vector<32x32xf32>
    %c2_49 = arith.constant 2 : index
    %72 = memref.load %arg6[%c2_49] : memref<3xf32, #tpu.memory_space<smem>>
    %73 = arith.mulf %72, %58 : f32
    %74 = vector.broadcast %73 : f32 to vector<32x32xf32>
    %75 = arith.mulf %74, %11 : vector<32x32xf32>
    %76 = arith.subf %71, %75 : vector<32x32xf32>
    %c0_50 = arith.constant 0 : index
    %c2_51 = arith.constant 2 : index
    %c0_52 = arith.constant 0 : index
    %c0_53 = arith.constant 0 : index
    %77 = vector.load %arg8[%c0_50, %c2_51, %c0_52, %c0_53] : memref<1x3x32x32xf32, #tpu.memory_space<vmem>>, vector<1x1x32x32xf32>
    %78 = vector.shape_cast %77 : vector<1x1x32x32xf32> to vector<32x32xf32>
    %79 = vector.shape_cast %76 : vector<32x32xf32> to vector<1x1x32x32xf32>
    tpu.vector_store %arg8[%c0_50, %c2_51, %c0_52, %c0_53], %79 {strides = array<i32>} : memref<1x3x32x32xf32, #tpu.memory_space<vmem>>, vector<1x1x32x32xf32>,
    return
  }
  func.func @transform_0(%arg0: i32, %arg1: i32) -> (i32, i32, i32, i32) {
    %c0_i32 = arith.constant 0 : i32
    %c0_i32_0 = arith.constant 0 : i32
    %c0_i32_1 = arith.constant 0 : i32
    %c0_i32_2 = arith.constant 0 : i32
    return %arg0, %c0_i32, %c0_i32_0, %c0_i32_1 : i32, i32, i32, i32
  }
  func.func @transform_1(%arg0: i32, %arg1: i32) -> (i32, i32, i32, i32) {
    %c0_i32 = arith.constant 0 : i32
    %c0_i32_0 = arith.constant 0 : i32
    %c0_i32_1 = arith.constant 0 : i32
    %c0_i32_2 = arith.constant 0 : i32
    %c0_i32_3 = arith.constant 0 : i32
    return %c0_i32, %c0_i32_0, %c0_i32_1, %c0_i32_2 : i32, i32, i32, i32
  }
  func.func @transform_2(%arg0: i32, %arg1: i32) -> (i32, i32) {
    %c0_i32 = arith.constant 0 : i32
    %c0_i32_0 = arith.constant 0 : i32
    return %arg1, %c0_i32 : i32, i32
  }
  func.func @transform_3(%arg0: i32, %arg1: i32) -> (i32, i32) {
    %c0_i32 = arith.constant 0 : i32
    %c0_i32_0 = arith.constant 0 : i32
    %c0_i32_1 = arith.constant 0 : i32
    return %c0_i32, %c0_i32_0 : i32, i32
  }
  func.func @transform_4(%arg0: i32, %arg1: i32) -> i32 {
    %c0_i32 = arith.constant 0 : i32
    %c0_i32_0 = arith.constant 0 : i32
    return %c0_i32 : i32
  }
  func.func @transform_5(%arg0: i32, %arg1: i32) -> i32 {
    %c0_i32 = arith.constant 0 : i32
    %c0_i32_0 = arith.constant 0 : i32
    return %c0_i32 : i32
  }
  func.func @transform_6(%arg0: i32, %arg1: i32) -> (i32, i32, i32, i32) {
    %c0_i32 = arith.constant 0 : i32
    %c0_i32_0 = arith.constant 0 : i32
    %c0_i32_1 = arith.constant 0 : i32
    return %arg0, %c0_i32, %arg1, %c0_i32_0 : i32, i32, i32, i32
  }
}

</mosaic_0001>

<bundles_post_ra>
// kernel: tpu_custom_call.1
= control target key start
LH: loop header
LB: loop body
LE: loop exit
PB: predicated region body
PF: predicated region fallthrough
CT: control target
= control target key end

     0   :  { %11 = vsyncpa [#allocation3], 0  ;;  %s754_s0 = inlined_call_operand.vmem [shape: f32[1,3,16,16], index: 0, kind: input, shape index: {}]   ;;  %s755_s1 = inlined_call_operand.hbm [shape: f32[1,3,16,16], index: 1, kind: input, shape index: {}]   ;;  %s756_s2 = inlined_call_operand.vmem [shape: f32[32,16], index: 2, kind: input, shape index: {}]   ;;  %s757_s3 = inlined_call_operand.hbm [shape: f32[16,32], index: 3, kind: input, shape index: {}]   ;;  %s758_s4 = inlined_call_operand.vmem [shape: f32[3], index: 4, kind: input, shape index: {}]   ;;  %s759_s5 = inlined_call_operand.vmem [shape: f32[3], index: 5, kind: input, shape index: {}]   ;;  %s760_s6 = inlined_call_operand.hbm [shape: f32[1,3,32,32], index: 6, kind: output, shape index: {}]  }
   0x1   :  { %12 = vsyncpa [#allocation7], 0 }
   0x2   :  { %13 = vsyncpa [#allocation5], 0 }
   0x3   :  { %14 = vsyncpa [#allocation10], 0 }
   0x4   :  { %15 = vsyncpa [#allocation4], 0  ;;  %s22_s23 = sshll.u32 %s755_s1, 4  ;;  %s609_s24 = smov [#allocation2]   ;;  %s23_s23 = int_to_ptr.hbm [resolvable:$true] %s22_s23 }
   0x5   :  { %s24_s25 = sshll.u32 %s609_s24, 4  ;;  %s37_s28 = sshll.u32 %s757_s3, 4  ;;  %s25_s25 = int_to_ptr.vmem [resolvable:$true] %s24_s25  ;;  %s38_s28 = int_to_ptr.hbm [resolvable:$true] %s37_s28 }
   0x6   :  { %s610_s29 = smov 128   ;;  %s611_s30 = smov 8  }
   0x7   :  { %30 = dma.hbm_to_vmem [thread:$0]  %s23_s23, 768, %s25_s25, [#allocation3], %s610_s29, %s610_s29, %s611_s30  }
   0x8   :  { %s612_s7 = smov [#allocation6]   ;;  %s51_s1 = sshll.u32 %s758_s4, 4  ;;  %s52_s1 = int_to_ptr.vmem [resolvable:$true] %s51_s1 }
   0x9   :  { %s39_s8 = sshll.u32 %s612_s7, 4  ;;  %s60_s12 = sshll.u32 %s759_s5, 4  ;;  %s40_s8 = int_to_ptr.vmem [resolvable:$true] %s39_s8  ;;  %s61_s12 = int_to_ptr.vmem [resolvable:$true] %s60_s12 }
   0xa   :  { %45 = dma.hbm_to_vmem [thread:$0]  %s38_s28, 256, %s40_s8, [#allocation7], %s610_s29, %s610_s29, %s611_s30  }
   0xb   :  { %s613_s13 = smov [#allocation8]   ;;  %s614_s14 = smov [#allocation9]  }
   0xc   :  { %54 = dma.vmem_to_smem %s52_s1, 16, %s613_s13, [#allocation5]  }
   0xd   :  { %63 = dma.vmem_to_smem %s61_s12, 16, %s614_s14, [#allocation10]  }
   0xe   :  { %599 = dma.done.wait [#allocation3], 768  }
   0xf   :  { %600 = vsyncadd [#allocation3], 4294966528 }
  0x10   :  { %601 = dma.done.wait [#allocation7], 256  }
  0x11   :  { %602 = vsyncadd [#allocation7], 4294967040 }
  0x12   :  { %603 = dma.done.wait [#allocation5], 16  }
  0x13   :  { %604 = vsyncadd [#allocation5], 4294967280 }
  0x14   :  { %605 = dma.done.wait [#allocation10], 16  }
  0x15   :  { %606 = vsyncadd [#allocation10], 4294967280 }
  0x16   :  { %80 = sfence }
  0x17   :  { %s670_s4 = sld [smem:[#allocation9]]  ;;  %v119_v0 = vld [vmem:[%s754_s0 + $0x8] sm:$0xff]  ;;  %v118_v2 = vld [vmem:[%s754_s0] sm:$0xff]  ;;  %v469_v5 = vld [vmem:[%s754_s0 + $0x18] sm:$0xff]  ;;  %vm131_vm0 = vcmask 130048   ;;  %v92_v57 = vlaneseq  ;;  %v615_v59 = vmov 0.0  }
  0x18   :  { %v121_v1 = vld [vmem:[#allocation2 + $0x8] sm:$0xff]  ;;  %v120_v4 = vld [vmem:[#allocation2] sm:$0xff]  ;;  %s678_s18 = sld [smem:[#allocation9 + $0x1]]  ;;  %v236_v7 = vld [vmem:[#allocation2 + $0x18] sm:$0xff]  ;;  %vm225_vm2 = vcmask 261120   ;;  %s616_s15 = smov [#allocation11]  }
  0x19   :  { %v123_v3 = vadd.f32 %v121_v1, %v119_v0  ;;  %v122_v6 = vadd.f32 %v120_v4, %v118_v2  ;;  %v468_v8 = vld [vmem:[%s754_s0 + $0x10] sm:$0xff]  ;;  %s686_s23 = sld [smem:[#allocation9 + $0x2]]  ;;  %v238_v10 = vadd.f32 %v469_v5, %v236_v7  ;;  %v481_v12 = vld [vmem:[%s754_s0 + $0x28] sm:$0xff]  ;;  %v480_v16 = vld [vmem:[%s754_s0 + $0x20] sm:$0xff]  ;;  %v93_v58 = vand.u32 127, %v92_v57  ;;  %s438_s16 = sshll.u32 %s616_s15, 4  ;;  %s439_s16 = int_to_ptr.vmem [resolvable:$true] %s438_s16 }
  0x1a   :  { %v235_v11 = vld [vmem:[#allocation2 + $0x10] sm:$0xff]  ;;  %v338_v15 = vld [vmem:[#allocation2 + $0x28] sm:$0xff]  ;;  %v337_v20 = vld [vmem:[#allocation2 + $0x20] sm:$0xff]  ;;  %s490_s12 = sld [smem:[#allocation8 + $0x2]] }
  0x1b   :  { %v125_v9 = vmax.f32 %v123_v3, 0.0  ;;  %v124_v13 = vmax.f32 %v122_v6, 0.0  ;;  %v237_v14 = vadd.f32 %v468_v8, %v235_v11  ;;  %v240_v18 = vmax.f32 %v238_v10, 0.0  ;;  %v113_v33 = vld [vmem:[%s756_s2 + $0x10] sm:$0xff]  ;;  %v111_v35 = vld [vmem:[%s756_s2] sm:$0xff]  ;;  %v114_v41 = vld [vmem:[%s756_s2 + $0x18] sm:$0xff] }
  0x1c   :  { %v340_v19 = vadd.f32 %v481_v12, %v338_v15  ;;  %v339_v24 = vadd.f32 %v480_v16, %v337_v20  ;;  %v112_v42 = vld [vmem:[%s756_s2 + $0x8] sm:$0xff]  ;;  %v116_v43 = vld [vmem:[#allocation6 + $0x8] sm:$0xff]  ;;  %v115_v44 = vld [vmem:[#allocation6] sm:$0xff]  ;;  %s214_s2 = sld [smem:[#allocation8]]  ;;  %vm98_vm1 = vcmp.lt.s32.totalorder %v93_v58, 20 }
  0x1d   :  { %v127_v17 = vmin.f32 %v125_v9, 255.0  ;;  %v128_v21 = vstv %s670_s4  ;;  %v126_v22 = vmin.f32 %v124_v13, 255.0  ;;  %v239_v23 = vmax.f32 %v237_v14, 0.0  ;;  %493 = vmatpush.msra.mxu3 %v116_v43  ;;  %199 = vmatpush.msra.mxu1 %v116_v43  ;;  %s478_s14 = sld [smem:[#allocation8 + $0x1]] }
  0x1e   :  { %v242_v26 = vmin.f32 %v240_v18, 255.0  ;;  %v243_v27 = vstv %s678_s18  ;;  %v342_v28 = vmax.f32 %v340_v19, 0.0  ;;  %v341_v32 = vmax.f32 %v339_v24, 0.0 }
  0x1f   :  { %v130_v25 = vmul.f32 %v128_v21, %v127_v17  ;;  %v129_v29 = vmul.f32 %v128_v21, %v126_v22  ;;  %v241_v30 = vmin.f32 %v239_v23, 255.0  ;;  %v345_v31 = vstv %s686_s23  ;;  %494 = vmatpush.msra.mxu3 %v115_v44  ;;  %200 = vmatpush.msra.mxu1 %v115_v44 }
  0x20   :  { %v245_v34 = vmul.f32 %v243_v27, %v242_v26  ;;  %v344_v36 = vmin.f32 %v342_v28, 255.0  ;;  %v343_v37 = vmin.f32 %v341_v32, 255.0  ;;  %v456_v60 = vsel %vm98_vm1, 1.0, %v615_v59  ;;  %s419_s13 = smul.f32 %s490_s12, %s686_s23 }
  0x21   :  { %491 = vmatpush.msra.mxu2 %v130_v25  ;;  %158 = vmatpush.msra.mxu0 %v130_v25  ;;  %v244_v38 = vmul.f32 %v243_v27, %v241_v30 }
  0x22   :  { %v347_v39 = vmul.f32 %v345_v31, %v344_v36  ;;  %v346_v40 = vmul.f32 %v345_v31, %v343_v37  ;;  %301 = vmatpush.msrb.mxu3 %v116_v43  ;;  %403 = vmatpush.msrb.mxu1 %v116_v43  ;;  %s215_s11 = smul.f32 %s214_s2, %s670_s4  ;;  %v420_v3 = vstv %s419_s13 }
  0x23   :  { %492 = vmatpush.msra.mxu2 %v129_v29  ;;  %159 = vmatpush.msra.mxu0 %v129_v29  ;;  %v421_v6 = vmul.f32 %v456_v60, %v420_v3  ;;  %s317_s4 = smul.f32 %s478_s14, %s678_s18  ;;  %v424_v22 = vmul.f32 0.0, %v420_v3  ;;  %s440_s18 = sshll.u32 %s760_s6, 4  ;;  %s441_s18 = int_to_ptr.hbm [resolvable:$true] %s440_s18 }
  0x24   :  { %461 = vmatmul.msk.f32.vlgmr.msra.gmra.mxu2 %vm131_vm0, %v113_v33  ;;  %459 = vmatmul.msk.f32.vlgmr.msra.gmra.mxu0 %vm131_vm0, %v111_v35  ;;  %v216_v61 = vstv %s215_s11 }
  0x25   :  { %260 = vmatpush.msrb.mxu2 %v245_v34  ;;  %362 = vmatpush.msrb.mxu0 %v347_v39  ;;  %v217_v62 = vmul.f32 %v456_v60, %v216_v61  ;;  %v220_v8 = vmul.f32 0.0, %v216_v61  ;;  %v318_v12 = vstv %s317_s4 }
  0x26   :  { %302 = vmatpush.msrb.mxu3 %v115_v44  ;;  %404 = vmatpush.msrb.mxu1 %v115_v44  ;;  %v319_v14 = vmul.f32 %v456_v60, %v318_v12  ;;  %v322_v27 = vmul.f32 0.0, %v318_v12 }
  0x27   :  { %261 = vmatpush.msrb.mxu2 %v244_v38  ;;  %363 = vmatpush.msrb.mxu0 %v346_v40 }
  0x2c   :  { %462 = vmatmul.msk.f32.gmra.mxu2 %vm131_vm0, %v114_v41  ;;  %460 = vmatmul.msk.f32.gmra.mxu0 %vm131_vm0, %v112_v42 }
  0x34   :  { %470 = vmatmul.msk.f32.vlgmr.msrb.gmra.mxu2 %vm131_vm0, %v111_v35  ;;  %482 = vmatmul.msk.f32.vlgmr.msrb.gmra.mxu0 %vm131_vm0, %v111_v35 }
  0x3c   :  { %471 = vmatmul.msk.f32.gmra.mxu2 %vm131_vm0, %v112_v42  ;;  %483 = vmatmul.msk.f32.gmra.mxu0 %vm131_vm0, %v112_v42 }
  0x44   :  { %472 = vmatmul.msk.f32.gmra.mxu2 %vm131_vm0, %v113_v33  ;;  %484 = vmatmul.msk.f32.gmra.mxu0 %vm131_vm0, %v113_v33 }
  0x4c   :  { %473 = vmatmul.msk.f32.gmra.mxu2 %vm131_vm0, %v114_v41  ;;  %485 = vmatmul.msk.f32.gmra.mxu0 %vm131_vm0, %v114_v41 }
  0xa1   :  { %v161_v45 = vpop.f32.mrf.mxu0 }
  0xa2   :  { %463 = vmatmul.msk.f32.vlgmr.msra.gmra.mxu1 %vm131_vm0, %v161_v45 }
  0xa7   :  { %v167_v46 = vpop.f32.mrf.mxu2 }
  0xa8   :  { %465 = vmatmul.msk.f32.vlgmr.msra.gmra.mxu3 %vm131_vm0, %v167_v46 }
  0xa9   :  { %v164_v47 = vpop.f32.mrf.mxu0 }
  0xaa   :  { %464 = vmatmul.msk.f32.gmra.mxu1 %vm131_vm0, %v164_v47 }
  0xaf   :  { %v170_v48 = vpop.f32.mrf.mxu2 }
  0xb0   :  { %466 = vmatmul.msk.f32.gmra.mxu3 %vm131_vm0, %v170_v48 }
  0xb1   :  { %v365_v49 = vpop.f32.mrf.mxu0 }
  0xb2   :  { %486 = vmatmul.msk.f32.vlgmr.msrb.gmra.mxu1 %vm131_vm0, %v365_v49 }
  0xb7   :  { %v263_v50 = vpop.f32.mrf.mxu2 }
  0xb8   :  { %474 = vmatmul.msk.f32.vlgmr.msrb.gmra.mxu3 %vm131_vm0, %v263_v50 }
  0xb9   :  { %v368_v51 = vpop.f32.mrf.mxu0 }
  0xba   :  { %487 = vmatmul.msk.f32.gmra.mxu1 %vm131_vm0, %v368_v51 }
  0xbf   :  { %v266_v52 = vpop.f32.mrf.mxu2 }
  0xc0   :  { %475 = vmatmul.msk.f32.gmra.mxu3 %vm131_vm0, %v266_v52 }
  0xc1   :  { %v371_v53 = vpop.f32.mrf.mxu0 }
  0xc2   :  { %488 = vmatmul.msk.f32.gmra.mxu1 %vm131_vm0, %v371_v53 }
  0xc7   :  { %v269_v54 = vpop.f32.mrf.mxu2 }
  0xc8   :  { %476 = vmatmul.msk.f32.gmra.mxu3 %vm131_vm0, %v269_v54 }
  0xc9   :  { %v374_v55 = vpop.f32.mrf.mxu0 }
  0xca   :  { %489 = vmatmul.msk.f32.gmra.mxu1 %vm131_vm0, %v374_v55 }
  0xcf   :  { %v272_v56 = vpop.f32.mrf.mxu2 }
  0xd0   :  { %477 = vmatmul.msk.f32.gmra.mxu3 %vm131_vm0, %v272_v56 }
 0x11f   :  { %v202_v63 = vpop.f32.mrf.mxu1 }
 0x120   :  { %v221_v0 = vsub.f32 %v202_v63, %v217_v62 }
 0x122   :  { %226 = vst.msk [vmem:[#allocation11] sm:$0xff] %vm225_vm2, %v221_v0 }
 0x127   :  { %v205_v1 = vpop.f32.mrf.mxu1 }
 0x128   :  { %v222_v2 = vsub.f32 %v205_v1, %v217_v62 }
 0x12a   :  { %227 = vst.msk [vmem:[#allocation11 + $0x8] sm:$0xff] %vm225_vm2, %v222_v2 }
 0x12b   :  { %v208_v4 = vpop.f32.mrf.mxu3 }
 0x12c   :  { %v223_v5 = vsub.f32 %v208_v4, %v217_v62 }
 0x12e   :  { %228 = vst.msk [vmem:[#allocation11 + $0x10] sm:$0xff] %vm225_vm2, %v223_v5 }
 0x12f   :  { %v406_v7 = vpop.f32.mrf.mxu1 }
 0x130   :  { %v425_v9 = vsub.f32 %v406_v7, %v421_v6 }
 0x132   :  { %430 = vst.msk [vmem:[#allocation11 + $0x40] sm:$0xff] %vm225_vm2, %v425_v9 }
 0x133   :  { %v211_v10 = vpop.f32.mrf.mxu3 }
 0x134   :  { %v224_v11 = vsub.f32 %v211_v10, %v220_v8 }
 0x136   :  { %229 = vst.msk [vmem:[#allocation11 + $0x18] sm:$0xff] %vm225_vm2, %v224_v11 }
 0x137   :  { %v409_v13 = vpop.f32.mrf.mxu1 }
 0x138   :  { %v426_v15 = vsub.f32 %v409_v13, %v421_v6 }
 0x13a   :  { %431 = vst.msk [vmem:[#allocation11 + $0x48] sm:$0xff] %vm225_vm2, %v426_v15 }
 0x13b   :  { %v304_v16 = vpop.f32.mrf.mxu3 }
 0x13c   :  { %v323_v17 = vsub.f32 %v304_v16, %v319_v14 }
 0x13e   :  { %328 = vst.msk [vmem:[#allocation11 + $0x20] sm:$0xff] %vm225_vm2, %v323_v17 }
 0x13f   :  { %v412_v18 = vpop.f32.mrf.mxu1 }
 0x140   :  { %v427_v19 = vsub.f32 %v412_v18, %v421_v6 }
 0x142   :  { %432 = vst.msk [vmem:[#allocation11 + $0x50] sm:$0xff] %vm225_vm2, %v427_v19 }
 0x143   :  { %v307_v20 = vpop.f32.mrf.mxu3 }
 0x144   :  { %v324_v21 = vsub.f32 %v307_v20, %v319_v14 }
 0x146   :  { %329 = vst.msk [vmem:[#allocation11 + $0x28] sm:$0xff] %vm225_vm2, %v324_v21 }
 0x147   :  { %v415_v23 = vpop.f32.mrf.mxu1 }
 0x148   :  { %v428_v24 = vsub.f32 %v415_v23, %v424_v22 }
 0x14a   :  { %433 = vst.msk [vmem:[#allocation11 + $0x58] sm:$0xff] %vm225_vm2, %v428_v24 }
 0x14b   :  { %v310_v25 = vpop.f32.mrf.mxu3 }
 0x14c   :  { %v325_v26 = vsub.f32 %v310_v25, %v319_v14 }
 0x14e   :  { %330 = vst.msk [vmem:[#allocation11 + $0x30] sm:$0xff] %vm225_vm2, %v325_v26 }
 0x153   :  { %v313_v28 = vpop.f32.mrf.mxu3 }
 0x154   :  { %v326_v29 = vsub.f32 %v313_v28, %v322_v27 }
 0x156   :  { %331 = vst.msk [vmem:[#allocation11 + $0x38] sm:$0xff] %vm225_vm2, %v326_v29 }
 0x157   :  { %446 = dma.vmem_to_hbm [thread:$0]  %s439_s16, 1536, %s441_s18, [#allocation4], %s610_s29, %s610_s29, %s611_s30  }
 0x158   :  { %607 = dma.done.wait [#allocation4], 1536  }
 0x159   :  { %608 = vsyncadd [#allocation4], 4294965760 }
 0x15a   :  { %451 = vsyncpa [#allocation3], 1 }
 0x15b   :  { %452 = vsyncpa [#allocation7], 1 }
 0x15c   :  { %453 = vsyncpa [#allocation4], 1 }
 0x15d   :  { %454 = vsyncpa [#allocation5], 1 }
 0x15e   :  { %455 = vsyncpa [#allocation10], 1 }

</bundles_post_ra>
